<compile_context>
chip_gen: v5e
topology: v5e:2x2
jax: 0.10.0
libtpu: 0.0.40
codegen_flags: <defaults>
</compile_context>

<pallas_src>
import functools
import math

import jax
import jax.numpy as jnp
from jax import lax
from jax.experimental import pallas as pl
from jax.experimental.pallas import tpu as pltpu


_CONTRACT_LAST = (((1,), (1,)), ((), ()))  # contract last dims, no batch dims


def _attn_kernel(x_ref, wqkv_ref, wo_ref, bias_ref, o_ref, *, num_heads, kd, vd):
    # x_ref    : (B*S, H)        f32   (batch folded into M)
    # wqkv_ref : (2*kd + vd, H)  bf16  (stacked PyTorch Linear rows: q, k, v)
    # wo_ref   : (H, vd)         bf16  (PyTorch layout; contracted on last dim)
    # bias_ref : (B*S, B*S)      f32   (block-diagonal causal additive bias)
    # o_ref    : (B*S, H)        f32
    hd_k = kd // num_heads
    hd_v = vd // num_heads

    x_b = x_ref[...].astype(jnp.bfloat16)          # one cast shared by the QKV matmul
    bias = bias_ref[...]                           # f32, hoisted once

    # Fused QKV projection: x @ [Wq; Wk; Wv]^T  -> (B*S, 2*kd + vd), single MXU push.
    qkv = lax.dot_general(x_b, wqkv_ref[...], _CONTRACT_LAST,
                          preferred_element_type=jnp.float32)

    scale = jnp.float32(hd_k ** -0.5)
    q_b = (qkv[:, :kd] * scale).astype(jnp.bfloat16)       # scale in f32, then cast
    k_b = qkv[:, kd:2 * kd].astype(jnp.bfloat16)
    v_b = qkv[:, 2 * kd:2 * kd + vd].astype(jnp.bfloat16)

    attn_heads = []
    for h in range(num_heads):     # static unroll: 4 independent chains for the scheduler
        q_h = q_b[:, h * hd_k:(h + 1) * hd_k]              # (B*S, hd_k) bf16
        k_h = k_b[:, h * hd_k:(h + 1) * hd_k]
        v_h = v_b[:, h * hd_v:(h + 1) * hd_v]

        # logits[i, j] = q_h[i] . k_h[j]  (contract head dim; no explicit .T)
        logits = lax.dot_general(q_h, k_h, _CONTRACT_LAST,
                                 preferred_element_type=jnp.float32)   # (B*S, B*S)
        logits = logits + bias      # causal within a batch block, -1e9 across blocks

        # softmax over keys in f32; cross-batch entries underflow to exactly 0.
        m = jnp.max(logits, axis=-1, keepdims=True)
        e = jnp.exp(logits - m)
        w = e * pl.reciprocal(jnp.sum(e, axis=-1, keepdims=True), approx=True)

        attn_heads.append(jnp.dot(w.astype(jnp.bfloat16), v_h,
                                  preferred_element_type=jnp.float32))  # (B*S, hd_v)

    # Head concat (lane shuffle, hides under MXU) + single fused output projection.
    attn = jnp.concatenate(attn_heads, axis=-1)             # (B*S, vd), head-major lanes
    out = lax.dot_general(attn.astype(jnp.bfloat16), wo_ref[...], _CONTRACT_LAST,
                          preferred_element_type=jnp.float32)           # (B*S, H)
    o_ref[...] = out.astype(o_ref.dtype)


def attn_forward(x, wq, wk, wv, wo, *, num_heads):
    """x: (B, S, H) f32.  wq/wk/wv: (kd|vd, H), wo: (H, vd) PyTorch-layout
    Linear weights (no bias).  Returns (B, S, H)."""
    B, S, H = x.shape
    kd = wq.shape[0]
    vd = wv.shape[0]
    BS = B * S

    # Weight prep: stack q/k/v rows (pure concat of PyTorch row layout, no
    # transposes); W_o stays in PyTorch layout and is contracted on its last dim.
    wqkv = jnp.concatenate([wq, wk, wv], axis=0).astype(jnp.bfloat16)   # (2*kd+vd, H)
    wo_b = wo.astype(jnp.bfloat16)                                      # (H, vd)

    # Block-diagonal causal additive bias over the folded (B*S) axis:
    # allowed iff same batch block AND key index <= query index.
    r = jnp.arange(BS)
    allowed = ((r[:, None] // S) == (r[None, :] // S)) & (r[None, :] <= r[:, None])
    bias = jnp.where(allowed, 0.0, -1e9).astype(jnp.float32)            # (BS, BS)

    x2d = x.reshape(BS, H)
    kernel = functools.partial(_attn_kernel, num_heads=num_heads, kd=kd, vd=vd)

    out2d = pl.pallas_call(
        kernel,
        out_shape=jax.ShapeDtypeStruct((BS, H), x.dtype),
        in_specs=[pl.BlockSpec(memory_space=pltpu.MemorySpace.VMEM)] * 4,
        out_specs=pl.BlockSpec(memory_space=pltpu.MemorySpace.VMEM),
    )(x2d, wqkv, wo_b, bias)
    return out2d.reshape(B, S, H)


def _xavier_uniform(key, out_dim, in_dim):
    a = math.sqrt(6.0 / (in_dim + out_dim))
    return jax.random.uniform(key, (out_dim, in_dim), jnp.float32, -a, a)


def _reference_attn(x, wq, wk, wv, wo, num_heads, matmul_dtype=jnp.float32):
    """Pure-JAX reference mirroring the PyTorch forward (global attn).
    `matmul_dtype` sets the matmul operand precision (accumulation is always
    f32) so the kernel's bf16-operand policy can be mirrored exactly."""
    B, S, H = x.shape
    kd = wq.shape[0]
    vd = wv.shape[0]
    hd_k = kd // num_heads
    hd_v = vd // num_heads
    f32 = jnp.float32
    md = matmul_dtype

    xm = x.astype(md)
    q = jnp.einsum('bsh,kh->bsk', xm, wq.astype(md), preferred_element_type=f32)
    k = jnp.einsum('bsh,kh->bsk', xm, wk.astype(md), preferred_element_type=f32)
    v = jnp.einsum('bsh,vh->bsv', xm, wv.astype(md), preferred_element_type=f32)
    q = q.reshape(B, S, num_heads, hd_k).transpose(0, 2, 1, 3) * (hd_k ** -0.5)
    k = k.reshape(B, S, num_heads, hd_k).transpose(0, 2, 1, 3)
    v = v.reshape(B, S, num_heads, hd_v).transpose(0, 2, 1, 3)
    bias = -1e9 * jnp.triu(jnp.ones((S, S), f32), 1)
    logits = jnp.einsum('bhkd,bhqd->bhqk', k.astype(md), q.astype(md),
                        preferred_element_type=f32) + bias
    w = jax.nn.softmax(logits, axis=-1)
    out = jnp.einsum('bhqk,bhkv->bhqv', w.astype(md), v.astype(md),
                     preferred_element_type=f32)
    out = out.transpose(0, 2, 1, 3).reshape(B, S, vd)
    return jnp.einsum('bsv,hv->bsh', out.astype(md), wo.astype(md),
                      preferred_element_type=f32)


if __name__ == "__main__":
    # hparams: hidden_size=32, total_key_depth=0 -> kd=32, total_value_depth=0
    # -> vd=32, num_heads=4, attn_type='global'
    B, S, H = 2, 16, 32
    num_heads = 4
    kd = vd = H

    key = jax.random.PRNGKey(0)
    kx, kq, kk, kv, ko = jax.random.split(key, 5)

    x = jax.random.normal(kx, (B, S, H), jnp.float32)
    wq = _xavier_uniform(kq, kd, H)
    wk = _xavier_uniform(kk, kd, H)
    wv = _xavier_uniform(kv, vd, H)
    wo = _xavier_uniform(ko, H, vd)

    out = attn_forward(x, wq, wk, wv, wo, num_heads=num_heads)
    out = jax.block_until_ready(out)
    assert out.shape == (B, S, H)

    # Reference with the same bf16-operand / f32-accumulation policy: tight check.
    ref_bf16 = _reference_attn(x, wq, wk, wv, wo, num_heads,
                               matmul_dtype=jnp.bfloat16)
    assert jnp.allclose(out, ref_bf16, atol=2e-2, rtol=2e-2), "mismatch vs bf16 reference"

    # Pure-f32 PyTorch-equivalent reference: loose check (bf16 operand rounding).
    ref_f32 = _reference_attn(x, wq, wk, wv, wo, num_heads,
                              matmul_dtype=jnp.float32)
    assert jnp.allclose(out, ref_f32, atol=1.5e-1, rtol=1.5e-1), "mismatch vs f32 reference"

    print("KERNEL_OK")
</pallas_src>

<mosaic_0001>
module attributes {stable_mosaic.version = 11 : i64} {
  func.func @_attn_kernel(%arg0: memref<32x32xf32, #tpu.memory_space<vmem>>, %arg1: memref<96x32xbf16, #tpu.memory_space<vmem>>, %arg2: memref<32x32xbf16, #tpu.memory_space<vmem>>, %arg3: memref<32x32xf32, #tpu.memory_space<vmem>>, %arg4: memref<32x32xf32, #tpu.memory_space<vmem>>) attributes {dimension_semantics = [], scalar_prefetch = 0 : i64, scratch_operands = 0 : i64, tpu.core_type = #tpu.core_type<tc>} {
    %c0 = arith.constant 0 : index
    %c0_0 = arith.constant 0 : index
    %0 = vector.load %arg0[%c0, %c0_0] : memref<32x32xf32, #tpu.memory_space<vmem>>, vector<32x32xf32>
    %1 = arith.truncf %0 : vector<32x32xf32> to vector<32x32xbf16>
    %c0_1 = arith.constant 0 : index
    %c0_2 = arith.constant 0 : index
    %2 = vector.load %arg3[%c0_1, %c0_2] : memref<32x32xf32, #tpu.memory_space<vmem>>, vector<32x32xf32>
    %c0_3 = arith.constant 0 : index
    %c0_4 = arith.constant 0 : index
    %3 = vector.load %arg1[%c0_3, %c0_4] : memref<96x32xbf16, #tpu.memory_space<vmem>>, vector<96x32xbf16>
    %cst = arith.constant dense<0.000000e+00> : vector<32x96xf32>
    %4 = tpu.matmul %1, %3, %cst {dimension_numbers = #tpu.dot_dimension_numbers<[1], [1], [0], [0], [0, 0, 1, 0], [], []>} : vector<32x32xbf16>, vector<96x32xbf16>, vector<32x96xf32> -> vector<32x96xf32>
    %5 = vector.extract_strided_slice %4 {offsets = [0, 0], sizes = [32, 32], strides = [1, 1]} : vector<32x96xf32> to vector<32x32xf32>
    %cst_5 = arith.constant 0.353553385 : f32
    %6 = vector.broadcast %cst_5 : f32 to vector<32x32xf32>
    %7 = arith.mulf %5, %6 : vector<32x32xf32>
    %8 = arith.truncf %7 : vector<32x32xf32> to vector<32x32xbf16>
    %9 = vector.extract_strided_slice %4 {offsets = [0, 32], sizes = [32, 32], strides = [1, 1]} : vector<32x96xf32> to vector<32x32xf32>
    %10 = arith.truncf %9 : vector<32x32xf32> to vector<32x32xbf16>
    %11 = vector.extract_strided_slice %4 {offsets = [0, 64], sizes = [32, 32], strides = [1, 1]} : vector<32x96xf32> to vector<32x32xf32>
    %12 = arith.truncf %11 : vector<32x32xf32> to vector<32x32xbf16>
    %13 = vector.extract_strided_slice %8 {offsets = [0, 0], sizes = [32, 8], strides = [1, 1]} : vector<32x32xbf16> to vector<32x8xbf16>
    %14 = vector.extract_strided_slice %10 {offsets = [0, 0], sizes = [32, 8], strides = [1, 1]} : vector<32x32xbf16> to vector<32x8xbf16>
    %15 = vector.extract_strided_slice %12 {offsets = [0, 0], sizes = [32, 8], strides = [1, 1]} : vector<32x32xbf16> to vector<32x8xbf16>
    %cst_6 = arith.constant dense<0.000000e+00> : vector<32x32xf32>
    %16 = tpu.matmul %13, %14, %cst_6 {dimension_numbers = #tpu.dot_dimension_numbers<[1], [1], [0], [0], [0, 0, 1, 0], [], []>} : vector<32x8xbf16>, vector<32x8xbf16>, vector<32x32xf32> -> vector<32x32xf32>
    %17 = arith.addf %16, %2 : vector<32x32xf32>
    %cst_7 = arith.constant dense<0xFF800000> : vector<32xf32>
    %18 = vector.multi_reduction <maximumf>, %17, %cst_7 [1] : vector<32x32xf32> to vector<32xf32>
    %19 = vector.shape_cast %18 : vector<32xf32> to vector<32x1xf32>
    %20 = vector.broadcast %19 : vector<32x1xf32> to vector<32x32xf32>
    %21 = arith.subf %17, %20 : vector<32x32xf32>
    %22 = math.exp %21 : vector<32x32xf32>
    %cst_8 = arith.constant dense<0.000000e+00> : vector<32xf32>
    %23 = vector.multi_reduction <add>, %22, %cst_8 [1] : vector<32x32xf32> to vector<32xf32>
    %24 = vector.shape_cast %23 : vector<32xf32> to vector<32x1xf32>
    %25 = tpu.reciprocal %24 {approx = true} : vector<32x1xf32> -> vector<32x1xf32>
    %26 = vector.broadcast %25 : vector<32x1xf32> to vector<32x32xf32>
    %27 = arith.mulf %22, %26 : vector<32x32xf32>
    %28 = arith.truncf %27 : vector<32x32xf32> to vector<32x32xbf16>
    %cst_9 = arith.constant dense<0.000000e+00> : vector<32x8xf32>
    %29 = tpu.matmul %28, %15, %cst_9 {dimension_numbers = #tpu.dot_dimension_numbers<[1], [0], [0], [1], [0, 0, 1, 1], [], []>} : vector<32x32xbf16>, vector<32x8xbf16>, vector<32x8xf32> -> vector<32x8xf32>
    %30 = vector.extract_strided_slice %8 {offsets = [0, 8], sizes = [32, 8], strides = [1, 1]} : vector<32x32xbf16> to vector<32x8xbf16>
    %31 = vector.extract_strided_slice %10 {offsets = [0, 8], sizes = [32, 8], strides = [1, 1]} : vector<32x32xbf16> to vector<32x8xbf16>
    %32 = vector.extract_strided_slice %12 {offsets = [0, 8], sizes = [32, 8], strides = [1, 1]} : vector<32x32xbf16> to vector<32x8xbf16>
    %cst_10 = arith.constant dense<0.000000e+00> : vector<32x32xf32>
    %33 = tpu.matmul %30, %31, %cst_10 {dimension_numbers = #tpu.dot_dimension_numbers<[1], [1], [0], [0], [0, 0, 1, 0], [], []>} : vector<32x8xbf16>, vector<32x8xbf16>, vector<32x32xf32> -> vector<32x32xf32>
    %34 = arith.addf %33, %2 : vector<32x32xf32>
    %cst_11 = arith.constant dense<0xFF800000> : vector<32xf32>
    %35 = vector.multi_reduction <maximumf>, %34, %cst_11 [1] : vector<32x32xf32> to vector<32xf32>
    %36 = vector.shape_cast %35 : vector<32xf32> to vector<32x1xf32>
    %37 = vector.broadcast %36 : vector<32x1xf32> to vector<32x32xf32>
    %38 = arith.subf %34, %37 : vector<32x32xf32>
    %39 = math.exp %38 : vector<32x32xf32>
    %cst_12 = arith.constant dense<0.000000e+00> : vector<32xf32>
    %40 = vector.multi_reduction <add>, %39, %cst_12 [1] : vector<32x32xf32> to vector<32xf32>
    %41 = vector.shape_cast %40 : vector<32xf32> to vector<32x1xf32>
    %42 = tpu.reciprocal %41 {approx = true} : vector<32x1xf32> -> vector<32x1xf32>
    %43 = vector.broadcast %42 : vector<32x1xf32> to vector<32x32xf32>
    %44 = arith.mulf %39, %43 : vector<32x32xf32>
    %45 = arith.truncf %44 : vector<32x32xf32> to vector<32x32xbf16>
    %cst_13 = arith.constant dense<0.000000e+00> : vector<32x8xf32>
    %46 = tpu.matmul %45, %32, %cst_13 {dimension_numbers = #tpu.dot_dimension_numbers<[1], [0], [0], [1], [0, 0, 1, 1], [], []>} : vector<32x32xbf16>, vector<32x8xbf16>, vector<32x8xf32> -> vector<32x8xf32>
    %47 = vector.extract_strided_slice %8 {offsets = [0, 16], sizes = [32, 8], strides = [1, 1]} : vector<32x32xbf16> to vector<32x8xbf16>
    %48 = vector.extract_strided_slice %10 {offsets = [0, 16], sizes = [32, 8], strides = [1, 1]} : vector<32x32xbf16> to vector<32x8xbf16>
    %49 = vector.extract_strided_slice %12 {offsets = [0, 16], sizes = [32, 8], strides = [1, 1]} : vector<32x32xbf16> to vector<32x8xbf16>
    %cst_14 = arith.constant dense<0.000000e+00> : vector<32x32xf32>
    %50 = tpu.matmul %47, %48, %cst_14 {dimension_numbers = #tpu.dot_dimension_numbers<[1], [1], [0], [0], [0, 0, 1, 0], [], []>} : vector<32x8xbf16>, vector<32x8xbf16>, vector<32x32xf32> -> vector<32x32xf32>
    %51 = arith.addf %50, %2 : vector<32x32xf32>
    %cst_15 = arith.constant dense<0xFF800000> : vector<32xf32>
    %52 = vector.multi_reduction <maximumf>, %51, %cst_15 [1] : vector<32x32xf32> to vector<32xf32>
    %53 = vector.shape_cast %52 : vector<32xf32> to vector<32x1xf32>
    %54 = vector.broadcast %53 : vector<32x1xf32> to vector<32x32xf32>
    %55 = arith.subf %51, %54 : vector<32x32xf32>
    %56 = math.exp %55 : vector<32x32xf32>
    %cst_16 = arith.constant dense<0.000000e+00> : vector<32xf32>
    %57 = vector.multi_reduction <add>, %56, %cst_16 [1] : vector<32x32xf32> to vector<32xf32>
    %58 = vector.shape_cast %57 : vector<32xf32> to vector<32x1xf32>
    %59 = tpu.reciprocal %58 {approx = true} : vector<32x1xf32> -> vector<32x1xf32>
    %60 = vector.broadcast %59 : vector<32x1xf32> to vector<32x32xf32>
    %61 = arith.mulf %56, %60 : vector<32x32xf32>
    %62 = arith.truncf %61 : vector<32x32xf32> to vector<32x32xbf16>
    %cst_17 = arith.constant dense<0.000000e+00> : vector<32x8xf32>
    %63 = tpu.matmul %62, %49, %cst_17 {dimension_numbers = #tpu.dot_dimension_numbers<[1], [0], [0], [1], [0, 0, 1, 1], [], []>} : vector<32x32xbf16>, vector<32x8xbf16>, vector<32x8xf32> -> vector<32x8xf32>
    %64 = vector.extract_strided_slice %8 {offsets = [0, 24], sizes = [32, 8], strides = [1, 1]} : vector<32x32xbf16> to vector<32x8xbf16>
    %65 = vector.extract_strided_slice %10 {offsets = [0, 24], sizes = [32, 8], strides = [1, 1]} : vector<32x32xbf16> to vector<32x8xbf16>
    %66 = vector.extract_strided_slice %12 {offsets = [0, 24], sizes = [32, 8], strides = [1, 1]} : vector<32x32xbf16> to vector<32x8xbf16>
    %cst_18 = arith.constant dense<0.000000e+00> : vector<32x32xf32>
    %67 = tpu.matmul %64, %65, %cst_18 {dimension_numbers = #tpu.dot_dimension_numbers<[1], [1], [0], [0], [0, 0, 1, 0], [], []>} : vector<32x8xbf16>, vector<32x8xbf16>, vector<32x32xf32> -> vector<32x32xf32>
    %68 = arith.addf %67, %2 : vector<32x32xf32>
    %cst_19 = arith.constant dense<0xFF800000> : vector<32xf32>
    %69 = vector.multi_reduction <maximumf>, %68, %cst_19 [1] : vector<32x32xf32> to vector<32xf32>
    %70 = vector.shape_cast %69 : vector<32xf32> to vector<32x1xf32>
    %71 = vector.broadcast %70 : vector<32x1xf32> to vector<32x32xf32>
    %72 = arith.subf %68, %71 : vector<32x32xf32>
    %73 = math.exp %72 : vector<32x32xf32>
    %cst_20 = arith.constant dense<0.000000e+00> : vector<32xf32>
    %74 = vector.multi_reduction <add>, %73, %cst_20 [1] : vector<32x32xf32> to vector<32xf32>
    %75 = vector.shape_cast %74 : vector<32xf32> to vector<32x1xf32>
    %76 = tpu.reciprocal %75 {approx = true} : vector<32x1xf32> -> vector<32x1xf32>
    %77 = vector.broadcast %76 : vector<32x1xf32> to vector<32x32xf32>
    %78 = arith.mulf %73, %77 : vector<32x32xf32>
    %79 = arith.truncf %78 : vector<32x32xf32> to vector<32x32xbf16>
    %cst_21 = arith.constant dense<0.000000e+00> : vector<32x8xf32>
    %80 = tpu.matmul %79, %66, %cst_21 {dimension_numbers = #tpu.dot_dimension_numbers<[1], [0], [0], [1], [0, 0, 1, 1], [], []>} : vector<32x32xbf16>, vector<32x8xbf16>, vector<32x8xf32> -> vector<32x8xf32>
    %81 = tpu.concatenate %29, %46, %63, %80 in 1 : vector<32x8xf32>, vector<32x8xf32>, vector<32x8xf32>, vector<32x8xf32> -> vector<32x32xf32>
    %82 = arith.truncf %81 : vector<32x32xf32> to vector<32x32xbf16>
    %c0_22 = arith.constant 0 : index
    %c0_23 = arith.constant 0 : index
    %83 = vector.load %arg2[%c0_22, %c0_23] : memref<32x32xbf16, #tpu.memory_space<vmem>>, vector<32x32xbf16>
    %cst_24 = arith.constant dense<0.000000e+00> : vector<32x32xf32>
    %84 = tpu.matmul %82, %83, %cst_24 {dimension_numbers = #tpu.dot_dimension_numbers<[1], [1], [0], [0], [0, 0, 1, 0], [], []>} : vector<32x32xbf16>, vector<32x32xbf16>, vector<32x32xf32> -> vector<32x32xf32>
    %c0_25 = arith.constant 0 : index
    %c0_26 = arith.constant 0 : index
    %85 = vector.load %arg4[%c0_25, %c0_26] : memref<32x32xf32, #tpu.memory_space<vmem>>, vector<32x32xf32>
    tpu.vector_store %arg4[%c0_25, %c0_26], %84 {strides = array<i32>} : memref<32x32xf32, #tpu.memory_space<vmem>>, vector<32x32xf32>,
    return
  }
}

</mosaic_0001>

<bundles_post_ra>
// kernel: tpu_custom_call.1
= control target key start
LH: loop header
LB: loop body
LE: loop exit
PB: predicated region body
PF: predicated region fallthrough
CT: control target
= control target key end

     0   :  { %9 = vsyncpa [#allocation3], 0  ;;  %s1298_s0 = inlined_call_operand.vmem [shape: f32[32,32], index: 0, kind: input, shape index: {}]   ;;  %s1299_s1 = inlined_call_operand.vmem [shape: bf16[96,32], index: 1, kind: input, shape index: {}]   ;;  %s1300_s2 = inlined_call_operand.hbm [shape: bf16[32,32], index: 2, kind: input, shape index: {}]   ;;  %s1301_s3 = inlined_call_operand.vmem [shape: f32[32,32], index: 3, kind: input, shape index: {}]   ;;  %s1302_s4 = inlined_call_operand.hbm [shape: f32[32,32], index: 4, kind: output, shape index: {}]  }
   0x1   :  { %10 = vsyncpa [#allocation4], 0  ;;  %s19_s17 = sshll.u32 %s1300_s2, 4  ;;  %s982_s18 = smov [#allocation2]   ;;  %s20_s17 = int_to_ptr.hbm [resolvable:$true] %s19_s17 }
   0x2   :  { %s21_s19 = sshll.u32 %s982_s18, 4  ;;  %s983_s20 = smov 64   ;;  %s22_s19 = int_to_ptr.vmem [resolvable:$true] %s21_s19 }
   0x3   :  { %s984_s21 = smov 4  }
   0x4   :  { %27 = dma.hbm_to_vmem [thread:$0]  %s20_s17, 256, %s22_s19, [#allocation3], %s983_s20, %s983_s20, %s984_s21  }
   0x5   :  { %978 = dma.done.wait [#allocation3], 256  }
   0x6   :  { %979 = vsyncadd [#allocation3], 4294967040  ;;  %vm87_vm0 = vcmask 261120   ;;  %v813_v0 = vld [vmem:[%s1299_s1 + $0x28] sm:$0xff]  ;;  %v812_v2 = vld [vmem:[%s1299_s1 + $0x20] sm:$0xff]  ;;  %s985_s14 = smov 120  }
   0x7   :  { %v110_v1 = vsel %vm87_vm0, %v813_v0, 0  ;;  %v107_v3 = vsel %vm87_vm0, %v812_v2, 0  ;;  %v811_v4 = vld [vmem:[%s1299_s1 + $0x18] sm:$0xff]  ;;  %v810_v6 = vld [vmem:[%s1299_s1 + $0x10] sm:$0xff]  ;;  %v809_v8 = vld [vmem:[%s1299_s1 + $0x8] sm:$0xff]  ;;  %s987_s15 = smov 96  }
   0x8   :  { %114 = vmatpush.bf16.xpose.msra.mxu0 %v110_v1  ;;  %v104_v5 = vsel %vm87_vm0, %v811_v4, 0  ;;  %v101_v7 = vsel %vm87_vm0, %v810_v6, 0  ;;  %v98_v9 = vsel %vm87_vm0, %v809_v8, 0  ;;  %v808_v10 = vld [vmem:[%s1299_s1] sm:$0xff]  ;;  %v36_v13 = vld [vmem:[%s1298_s0 + $0x8] sm:$0xff]  ;;  %v37_v15 = vld [vmem:[%s1298_s0 + $0x10] sm:$0xff] }
   0x9   :  { %v95_v11 = vsel %vm87_vm0, %v808_v10, 0  ;;  %v35_v12 = vld [vmem:[%s1298_s0] sm:$0xff]  ;;  %v38_v16 = vld [vmem:[%s1298_s0 + $0x18] sm:$0xff]  ;;  %s986_s0 = smov 88   ;;  %vm167_vm1 = vcmask 64512   ;;  %v1102_v61 = vld [vmem:[%s1301_s3 + $0x8] sm:$0xff] }
   0xa   :  { %v39_v14 = vpack.c.bf16 %v36_v13, %v35_v12  ;;  %v40_v17 = vpack.c.bf16 %v38_v16, %v37_v15  ;;  %v1095_v56 = vld [vmem:[%s1301_s3] sm:$0xff]  ;;  %v1111_v4 = vld [vmem:[%s1301_s3 + $0x10] sm:$0xff]  ;;  %v1125_v13 = vld [vmem:[%s1301_s3 + $0x18] sm:$0xff]  ;;  %s988_s3 = smov 56   ;;  %s990_s24 = smov 72   ;;  %vm676_vm2 = vcmask 130048  }
   0xb   :  { %s991_s25 = smov 112   ;;  %s992_s26 = smov 104   ;;  %vm681_vm3 = vcmask 195584  }
   0xc   :  { %s993_s27 = smov 48   ;;  %s994_s28 = smov 40  }
   0xd   :  { %s995_s29 = smov 8   ;;  %s996_s30 = smov 16  }
   0xe   :  { %s997_s5 = smov 24   ;;  %s998_s6 = smov [#allocation5]  }
   0xf   :  { %s741_s7 = sshll.u32 %s998_s6, 4  ;;  %s743_s10 = sshll.u32 %s1302_s4, 4  ;;  %s742_s7 = int_to_ptr.vmem [resolvable:$true] %s741_s7  ;;  %s744_s10 = int_to_ptr.hbm [resolvable:$true] %s743_s10 }
  0x10   :  { %115 = vmatpush.bf16.xpose.msra.mxu0 %v107_v3  ;;  %s999_s11 = smov 128  }
  0x18   :  { %116 = vmatpush.bf16.xpose.msra.mxu0 %v104_v5 }
  0x20   :  { %117 = vmatpush.bf16.xpose.msra.mxu0 %v101_v7 }
  0x28   :  { %118 = vmatpush.bf16.xpose.msra.mxu0 %v98_v9 }
  0x30   :  { %119 = vmatpush.bf16.xpose.msra.mxu0 %v95_v11 }
  0x37   :  { %780 = vmatmul.msk.bf16.vlgmr.msra.gmra.mxu0 %vm87_vm0, %v39_v14 }
  0x47   :  { %781 = vmatmul.msk.bf16.gmra.mxu0 %vm87_vm0, %v40_v17 }
  0xb4   :  { %v121_v18 = vpop.f32.mrf.mxu0 }
  0xb5   :  { %v131_v19 = vmul.f32 0.35355338, %v121_v18  ;;  %v139_v41 = vpack.c.bf16 %v121_v18, %v121_v18 }
  0xb7   :  { %v135_v21 = vpack.c.bf16 %v131_v19, %v131_v19  ;;  %v157_v44 = vunpack.c.l.b16 %v139_v41 }
  0xb9   :  { %v147_v24 = vunpack.c.l.b16 %v135_v21 }
  0xbc   :  { %v123_v20 = vpop.f32.mrf.mxu0 }
  0xbd   :  { %v132_v22 = vmul.f32 0.35355338, %v123_v20  ;;  %v140_v37 = vpack.c.bf16 %v123_v20, %v123_v20 }
  0xbf   :  { %v136_v23 = vpack.c.bf16 %v132_v22, %v132_v22  ;;  %v158_v43 = vunpack.c.l.b16 %v140_v37 }
  0xc1   :  { %v148_v25 = vunpack.c.l.b16 %v136_v23  ;;  %v1078_v45 = vpack.c.b16 %v158_v43, %v157_v44 }
  0xc3   :  { %v1068_v26 = vpack.c.b16 %v148_v25, %v147_v24 }
  0xc4   :  { %v126_v27 = vpop.f32.mrf.mxu0 }
  0xc5   :  { %276 = vrot.lane.b32.xlu2 %v1068_v26, %s985_s14  ;;  %v133_v28 = vmul.f32 0.35355338, %v126_v27  ;;  %v141_v29 = vpack.c.bf16 %v126_v27, %v126_v27 }
  0xc7   :  { %v137_v31 = vpack.c.bf16 %v133_v28, %v133_v28  ;;  %v159_v34 = vunpack.c.l.b16 %v141_v29 }
  0xc9   :  { %v149_v38 = vunpack.c.l.b16 %v137_v31 }
  0xcc   :  { %v128_v30 = vpop.f32.mrf.mxu0 }
  0xcd   :  { %v134_v32 = vmul.f32 0.35355338, %v128_v30  ;;  %v142_v33 = vpack.c.bf16 %v128_v30, %v128_v30 }
  0xcf   :  { %v138_v35 = vpack.c.bf16 %v134_v32, %v134_v32  ;;  %v160_v36 = vunpack.c.l.b16 %v142_v33 }
  0xd1   :  { %v150_v39 = vunpack.c.l.b16 %v138_v35  ;;  %v1071_v40 = vpack.c.b16 %v160_v36, %v159_v34 }
  0xd3   :  { %v1073_v42 = vpack.c.b16 %v150_v39, %v149_v38  ;;  %282 = vrot.lane.b32.xlu1 %v1071_v40, %s986_s0  ;;  %165 = vrot.lane.b32.xlu0 %v1071_v40, %s987_s15 }
  0xd5   :  { %278 = vrot.lane.b32.xlu2 %v1073_v42, %s985_s14 }
  0xdb   :  { %280 = vrot.lane.b32.xlu1 %v1078_v45, %s986_s0  ;;  %163 = vrot.lane.b32.xlu0 %v1078_v45, %s987_s15 }
 0x11f   :  { %v277_v54 = vpop.permute.xlu2 %276 }
 0x12f   :  { %v279_v55 = vpop.permute.xlu2 %278 }
 0x145   :  { %v283_v46 = vpop.permute.xlu1 %282  ;;  %v166_v47 = vpop.permute.xlu0 %165 }
 0x146   :  { %v178_v48 = vsel %vm167_vm1, %v166_v47, 0  ;;  %v294_v49 = vsel %vm167_vm1, %v283_v46, 0 }
 0x147   :  { %186 = vmatpush.bf16.xpose.msra.mxu1 %v178_v48  ;;  %302 = vmatpush.bf16.xpose.msra.mxu3 %v294_v49 }
 0x14d   :  { %v281_v50 = vpop.permute.xlu1 %280  ;;  %v164_v51 = vpop.permute.xlu0 %163 }
 0x14e   :  { %v175_v52 = vsel %vm167_vm1, %v164_v51, 0  ;;  %v291_v53 = vsel %vm167_vm1, %v281_v50, 0 }
 0x14f   :  { %187 = vmatpush.bf16.xpose.msra.mxu1 %v175_v52  ;;  %303 = vmatpush.bf16.xpose.msra.mxu3 %v291_v53 }
 0x156   :  { %782 = vmatmul.msk.bf16.vlgmr.msra.gmra.mxu1 %vm167_vm1, %v1068_v26  ;;  %786 = vmatmul.msk.bf16.vlgmr.msra.gmra.mxu3 %vm167_vm1, %v277_v54 }
 0x166   :  { %783 = vmatmul.msk.bf16.gmra.mxu1 %vm167_vm1, %v1073_v42  ;;  %787 = vmatmul.msk.bf16.gmra.mxu3 %vm167_vm1, %v279_v55 }
 0x1d3   :  { %v189_v57 = vpop.f32.mrf.mxu1 }
 0x1d4   :  { %v190_v58 = vadd.f32 %v189_v57, %v1095_v56 }
 0x1d6   :  { %v199_v59 = vsel %vm87_vm0, %v190_v58, -inf }
 0x1d7   :  { %200 = vmax.xlane.f32.xlu0 %v199_v59 }
 0x1d9   :  { %v305_v60 = vpop.f32.mrf.mxu3 }
 0x1da   :  { %v306_v62 = vadd.f32 %v305_v60, %v1095_v56 }
 0x1db   :  { %v191_v63 = vpop.f32.mrf.mxu1 }
 0x1dc   :  { %v192_v0 = vadd.f32 %v191_v63, %v1102_v61  ;;  %v315_v2 = vsel %vm87_vm0, %v306_v62, -inf }
 0x1de   :  { %v202_v1 = vsel %vm87_vm0, %v192_v0, -inf }
 0x1df   :  { %203 = vmax.xlane.f32.xlu1 %v202_v1  ;;  %316 = vmax.xlane.f32.xlu0 %v315_v2 }
 0x1e1   :  { %v307_v3 = vpop.f32.mrf.mxu3 }
 0x1e2   :  { %v308_v5 = vadd.f32 %v307_v3, %v1102_v61 }
 0x1e3   :  { %v194_v6 = vpop.f32.mrf.mxu1 }
 0x1e4   :  { %v195_v7 = vadd.f32 %v194_v6, %v1111_v4  ;;  %v318_v8 = vsel %vm87_vm0, %v308_v5, -inf }
 0x1e6   :  { %v205_v9 = vsel %vm87_vm0, %v195_v7, -inf }
 0x1e7   :  { %319 = vmax.xlane.f32.xlu1 %v318_v8  ;;  %206 = vmax.xlane.f32.xlu2 %v205_v9 }
 0x1e9   :  { %v310_v10 = vpop.f32.mrf.mxu3 }
 0x1ea   :  { %v1118_v11 = vadd.f32 %v310_v10, %v1111_v4 }
 0x1eb   :  { %v196_v14 = vpop.f32.mrf.mxu1 }
 0x1ec   :  { %v321_v12 = vsel %vm87_vm0, %v1118_v11, -inf  ;;  %v197_v16 = vadd.f32 %v196_v14, %v1125_v13 }
 0x1ee   :  { %v208_v19 = vsel %vm87_vm0, %v197_v16, -inf }
 0x1ef   :  { %322 = vmax.xlane.f32.xlu2 %v321_v12 }
 0x1f1   :  { %v312_v15 = vpop.f32.mrf.mxu3 }
 0x1f2   :  { %v1129_v17 = vadd.f32 %v312_v15, %v1125_v13 }
 0x1f4   :  { %v324_v18 = vsel %vm87_vm0, %v1129_v17, -inf }
 0x1f5   :  { %325 = vmax.xlane.f32.xlu0 %v324_v18 }
 0x1f7   :  { %209 = vmax.xlane.f32.xlu2 %v208_v19 }
 0x200   :  { %245 = vrot.lane.b32.xlu1 %v1078_v45, %s983_s20 }
 0x209   :  { %247 = vrot.lane.b32.xlu0 %v1071_v40, %s983_s20  ;;  %s989_s20 = smov 80  }
 0x24a   :  { %v201_v20 = vpop.xlane.xlu0 %200 }
 0x24b   :  { %v211_v21 = vsub.f32 %v190_v58, %v201_v20 }
 0x24d   :  { %v215_v22 = vmul.f32 1.442695, %v211_v21 }
 0x24f   :  { %866 = vpow2.f32 %v215_v22 }
 0x252   :  { %v204_v23 = vpop.xlane.xlu1 %203  ;;  %v317_v24 = vpop.xlane.xlu0 %316 }
 0x253   :  { %v212_v25 = vsub.f32 %v192_v0, %v204_v23  ;;  %v327_v27 = vsub.f32 %v306_v62, %v317_v24 }
 0x255   :  { %v1138_v28 = vpop.eup %866  ;;  %v217_v29 = vmul.f32 1.442695, %v212_v25  ;;  %v331_v30 = vmul.f32 1.442695, %v327_v27 }
 0x256   :  { %v223_v31 = vsel %vm87_vm0, %v1138_v28, 0.0 }
 0x257   :  { %868 = vpow2.f32 %v217_v29  ;;  %224 = vadd.xlane.f32.xlu1 %v223_v31 }
 0x258   :  { %870 = vpow2.f32 %v331_v30 }
 0x25a   :  { %v320_v32 = vpop.xlane.xlu1 %319  ;;  %v207_v33 = vpop.xlane.xlu2 %206 }
 0x25b   :  { %v328_v34 = vsub.f32 %v308_v5, %v320_v32  ;;  %v213_v37 = vsub.f32 %v195_v7, %v207_v33 }
 0x25d   :  { %v1142_v35 = vpop.eup %868  ;;  %v333_v36 = vmul.f32 1.442695, %v328_v34  ;;  %v219_v43 = vmul.f32 1.442695, %v213_v37 }
 0x25e   :  { %v1144_v38 = vpop.eup %870  ;;  %v226_v39 = vsel %vm87_vm0, %v1142_v35, 0.0 }
 0x25f   :  { %872 = vpow2.f32 %v333_v36  ;;  %v339_v41 = vsel %vm87_vm0, %v1144_v38, 0.0  ;;  %227 = vadd.xlane.f32.xlu2 %v226_v39 }
 0x260   :  { %340 = vadd.xlane.f32.xlu0 %v339_v41  ;;  %874 = vpow2.f32 %v219_v43 }
 0x262   :  { %v323_v44 = vpop.xlane.xlu2 %322 }
 0x263   :  { %v329_v59 = vsub.f32 %v1118_v11, %v323_v44 }
 0x265   :  { %v1150_v46 = vpop.eup %872  ;;  %v335_v60 = vmul.f32 1.442695, %v329_v59 }
 0x266   :  { %v342_v47 = vsel %vm87_vm0, %v1150_v46, 0.0  ;;  %v1154_v49 = vpop.eup %874 }
 0x267   :  { %343 = vadd.xlane.f32.xlu2 %v342_v47  ;;  %v229_v52 = vsel %vm87_vm0, %v1154_v49, 0.0 }
 0x268   :  { %v326_v53 = vpop.xlane.xlu0 %325 }
 0x269   :  { %v330_v0 = vsub.f32 %v1129_v17, %v326_v53 }
 0x26a   :  { %v210_v48 = vpop.xlane.xlu2 %209 }
 0x26b   :  { %v214_v50 = vsub.f32 %v197_v16, %v210_v48  ;;  %v337_v1 = vmul.f32 1.442695, %v330_v0 }
 0x26d   :  { %v221_v51 = vmul.f32 1.442695, %v214_v50 }
 0x26f   :  { %876 = vpow2.f32 %v221_v51  ;;  %230 = vadd.xlane.f32.xlu2 %v229_v52 }
 0x270   :  { %363 = vrot.lane.b32.xlu1 %v1071_v40, %s988_s3  ;;  %878 = vpow2.f32 %v335_v60 }
 0x271   :  { %880 = vpow2.f32 %v337_v1 }
 0x272   :  { %v246_v58 = vpop.permute.xlu1 %245 }
 0x274   :  { %398 = vrot.lane.b32.xlu0 %v1071_v40, %s989_s20 }
 0x275   :  { %v877_v54 = vpop.eup %876 }
 0x276   :  { %v232_v55 = vsel %vm87_vm0, %v877_v54, 0.0  ;;  %v1167_v62 = vpop.eup %878 }
 0x277   :  { %233 = vadd.xlane.f32.xlu2 %v232_v55  ;;  %v345_v63 = vsel %vm87_vm0, %v1167_v62, 0.0  ;;  %v881_v2 = vpop.eup %880 }
 0x27b   :  { %v248_v57 = vpop.permute.xlu0 %247 }
 0x27c   :  { %514 = vrot.lane.b32.xlu0 %v1071_v40, %s990_s24  ;;  %263 = vmatpush.bf16.msra.mxu2 %v248_v57 }
 0x280   :  { %264 = vmatpush.bf16.msra.mxu2 %v246_v58 }
 0x284   :  { %392 = vrot.lane.b32.xlu0 %v1068_v26, %s991_s25 }
 0x28c   :  { %508 = vrot.lane.b32.xlu0 %v1068_v26, %s992_s26  ;;  %v348_v26 = vsel %vm87_vm0, %v881_v2, 0.0 }
 0x28f   :  { %361 = vrot.lane.b32.xlu2 %v1078_v45, %s988_s3 }
 0x294   :  { %510 = vrot.lane.b32.xlu0 %v1073_v42, %s992_s26 }
 0x29a   :  { %346 = vadd.xlane.f32.xlu1 %v345_v63 }
 0x2b3   :  { %396 = vrot.lane.b32.xlu1 %v1078_v45, %s989_s20 }
 0x2b8   :  { %349 = vadd.xlane.f32.xlu2 %v348_v26 }
 0x2bb   :  { %394 = vrot.lane.b32.xlu1 %v1073_v42, %s991_s25 }
 0x2ca   :  { %v225_v3 = vpop.xlane.xlu1 %224 }
 0x2cb   :  { %882 = vrcp.f32 %v225_v3 }
 0x2d0   :  { %512 = vrot.lane.b32.xlu2 %v1078_v45, %s990_s24 }
 0x2d1   :  { %v883_v6 = vpop.eup %882 }
 0x2d2   :  { %v228_v5 = vpop.xlane.xlu2 %227  ;;  %v239_v9 = vmul.f32 %v883_v6, %v1138_v28 }
 0x2d3   :  { %884 = vrcp.f32 %v228_v5  ;;  %v341_v12 = vpop.xlane.xlu0 %340 }
 0x2d9   :  { %v885_v7 = vpop.eup %884 }
 0x2da   :  { %v344_v8 = vpop.xlane.xlu2 %343  ;;  %v240_v10 = vmul.f32 %v885_v7, %v1142_v35 }
 0x2dc   :  { %v243_v11 = vpack.c.bf16 %v240_v10, %v239_v9 }
 0x2de   :  { %784 = vmatmul.msk.bf16.vlgmr.msra.gmra.mxu2 %vm87_vm0, %v243_v11 }
 0x2e2   :  { %v364_v14 = vpop.permute.xlu1 %363  ;;  %v231_v15 = vpop.xlane.xlu2 %230 }
 0x2e3   :  { %379 = vmatpush.bf16.msrb.mxu2 %v364_v14  ;;  %886 = vrcp.f32 %v231_v15 }
 0x2e6   :  { %v399_v42 = vpop.permute.xlu0 %398 }
 0x2e7   :  { %v410_v16 = vsel %vm167_vm1, %v399_v42, 0 }
 0x2e8   :  { %418 = vmatpush.bf16.xpose.msrb.mxu1 %v410_v16 }
 0x2e9   :  { %v887_v18 = vpop.eup %886 }
 0x2ea   :  { %v234_v17 = vpop.xlane.xlu2 %233  ;;  %v241_v22 = vmul.f32 %v887_v18, %v1154_v49 }
 0x2eb   :  { %888 = vrcp.f32 %v234_v17 }
 0x2ec   :  { %890 = vrcp.f32 %v344_v8 }
 0x2ed   :  { %892 = vrcp.f32 %v341_v12 }
 0x2ee   :  { %v515_v19 = vpop.permute.xlu0 %514 }
 0x2ef   :  { %v526_v24 = vsel %vm167_vm1, %v515_v19, 0 }
 0x2f1   :  { %v889_v20 = vpop.eup %888 }
 0x2f2   :  { %v362_v21 = vpop.permute.xlu2 %361  ;;  %v242_v23 = vmul.f32 %v889_v20, %v877_v54  ;;  %v891_v27 = vpop.eup %890 }
 0x2f3   :  { %380 = vmatpush.bf16.msrb.mxu2 %v362_v21  ;;  %v893_v28 = vpop.eup %892  ;;  %v356_v29 = vmul.f32 %v891_v27, %v1150_v46 }
 0x2f4   :  { %v244_v25 = vpack.c.bf16 %v242_v23, %v241_v22  ;;  %v355_v30 = vmul.f32 %v893_v28, %v1144_v38 }
 0x2f6   :  { %785 = vmatmul.msk.bf16.gmra.mxu2 %vm87_vm0, %v244_v25  ;;  %v359_v31 = vpack.c.bf16 %v356_v29, %v355_v30  ;;  %v393_v36 = vpop.permute.xlu0 %392 }
 0x2f7   :  { %534 = vmatpush.bf16.xpose.msra.mxu2 %v526_v24 }
 0x2fe   :  { %v509_v48 = vpop.permute.xlu0 %508 }
 0x306   :  { %788 = vmatmul.msk.bf16.vlgmr.msrb.gmra.mxu2 %vm87_vm0, %v359_v31  ;;  %v511_v49 = vpop.permute.xlu0 %510 }
 0x30d   :  { %v347_v32 = vpop.xlane.xlu1 %346 }
 0x30e   :  { %894 = vrcp.f32 %v347_v32 }
 0x314   :  { %v895_v37 = vpop.eup %894 }
 0x315   :  { %v357_v43 = vmul.f32 %v895_v37, %v1167_v62 }
 0x325   :  { %v397_v33 = vpop.permute.xlu1 %396 }
 0x326   :  { %v407_v34 = vsel %vm167_vm1, %v397_v33, 0 }
 0x327   :  { %419 = vmatpush.bf16.xpose.msrb.mxu1 %v407_v34 }
 0x32b   :  { %v350_v35 = vpop.xlane.xlu2 %349 }
 0x32c   :  { %896 = vrcp.f32 %v350_v35 }
 0x32d   :  { %v395_v47 = vpop.permute.xlu1 %394 }
 0x32e   :  { %790 = vmatmul.msk.bf16.vlgmr.msrb.gmra.mxu1 %vm167_vm1, %v393_v36 }
 0x332   :  { %v897_v39 = vpop.eup %896 }
 0x333   :  { %v513_v41 = vpop.permute.xlu2 %512  ;;  %v358_v38 = vmul.f32 %v897_v39, %v881_v2 }
 0x334   :  { %v523_v44 = vsel %vm167_vm1, %v513_v41, 0 }
 0x335   :  { %535 = vmatpush.bf16.xpose.msra.mxu2 %v523_v44  ;;  %v360_v46 = vpack.c.bf16 %v358_v38, %v357_v43 }
 0x337   :  { %789 = vmatmul.msk.bf16.gmra.mxu2 %vm87_vm0, %v360_v46 }
 0x33e   :  { %791 = vmatmul.msk.bf16.gmra.mxu1 %vm167_vm1, %v395_v47 }
 0x347   :  { %794 = vmatmul.msk.bf16.vlgmr.msra.gmra.mxu2 %vm167_vm1, %v509_v48 }
 0x357   :  { %795 = vmatmul.msk.bf16.gmra.mxu2 %vm167_vm1, %v511_v49 }
 0x361   :  { %v1194_v50 = vpop.f32.mrf.mxu2 }
 0x369   :  { %v1196_v51 = vpop.f32.mrf.mxu2 }
 0x379   :  { %v1198_v52 = vpop.f32.mrf.mxu2 }
 0x381   :  { %v1200_v53 = vpop.f32.mrf.mxu2 }
 0x389   :  { %v1202_v54 = vpop.f32.mrf.mxu2 }
 0x391   :  { %v1204_v55 = vpop.f32.mrf.mxu2 }
 0x392   :  { %v836_v57 = vpack.i.bf16 %v1204_v55, %v1202_v54 }
 0x3ab   :  { %v421_v58 = vpop.f32.mrf.mxu1 }
 0x3ac   :  { %v422_v59 = vadd.f32 %v421_v58, %v1095_v56 }
 0x3ae   :  { %v431_v60 = vsel %vm87_vm0, %v422_v59, -inf }
 0x3af   :  { %432 = vmax.xlane.f32.xlu1 %v431_v60 }
 0x3b3   :  { %v423_v62 = vpop.f32.mrf.mxu1 }
 0x3b4   :  { %v424_v63 = vadd.f32 %v423_v62, %v1102_v61 }
 0x3b6   :  { %v434_v0 = vsel %vm87_vm0, %v424_v63, -inf }
 0x3b7   :  { %435 = vmax.xlane.f32.xlu0 %v434_v0 }
 0x3ba   :  { %v1212_v1 = vpop.f32.mrf.mxu2 }
 0x3bb   :  { %v426_v2 = vpop.f32.mrf.mxu1 }
 0x3bc   :  { %v427_v26 = vadd.f32 %v426_v2, %v1111_v4 }
 0x3be   :  { %v437_v3 = vsel %vm87_vm0, %v427_v26, -inf }
 0x3bf   :  { %438 = vmax.xlane.f32.xlu2 %v437_v3 }
 0x3c2   :  { %v1216_v5 = vpop.f32.mrf.mxu2 }
 0x3c3   :  { %v851_v6 = vpack.i.bf16 %v1216_v5, %v1212_v1  ;;  %v428_v7 = vpop.f32.mrf.mxu1 }
 0x3c4   :  { %v429_v8 = vadd.f32 %v428_v7, %v1125_v13 }
 0x3c6   :  { %v440_v9 = vsel %vm87_vm0, %v429_v8, -inf }
 0x3c7   :  { %441 = vmax.xlane.f32.xlu1 %v440_v9 }
 0x3ca   :  { %v537_v10 = vpop.f32.mrf.mxu2 }
 0x3cb   :  { %v538_v11 = vadd.f32 %v537_v10, %v1095_v56 }
 0x3cd   :  { %v547_v12 = vsel %vm87_vm0, %v538_v11, -inf }
 0x3ce   :  { %548 = vmax.xlane.f32.xlu0 %v547_v12 }
 0x3d2   :  { %v539_v14 = vpop.f32.mrf.mxu2 }
 0x3d3   :  { %v540_v24 = vadd.f32 %v539_v14, %v1102_v61 }
 0x3d5   :  { %v550_v30 = vsel %vm87_vm0, %v540_v24, -inf }
 0x3da   :  { %v542_v15 = vpop.f32.mrf.mxu2 }
 0x3db   :  { %v543_v32 = vadd.f32 %v542_v15, %v1111_v4 }
 0x3dd   :  { %v553_v35 = vsel %vm87_vm0, %v543_v32, -inf }
 0x3e2   :  { %v544_v42 = vpop.f32.mrf.mxu2 }
 0x3e3   :  { %v1225_v16 = vadd.f32 %v544_v42, %v1125_v13 }
 0x3e5   :  { %v556_v17 = vsel %vm87_vm0, %v1225_v16, -inf }
 0x3e6   :  { %557 = vmax.xlane.f32.xlu0 %v556_v17 }
 0x3fa   :  { %479 = vrot.lane.b32.xlu0 %v1071_v40, %s993_s27 }
 0x422   :  { %v433_v18 = vpop.xlane.xlu1 %432 }
 0x423   :  { %v443_v19 = vsub.f32 %v422_v59, %v433_v18 }
 0x425   :  { %v447_v56 = vmul.f32 1.442695, %v443_v19 }
 0x427   :  { %898 = vpow2.f32 %v447_v56 }
 0x42a   :  { %v436_v20 = vpop.xlane.xlu0 %435 }
 0x42b   :  { %v444_v21 = vsub.f32 %v424_v63, %v436_v20 }
 0x42d   :  { %v1231_v22 = vpop.eup %898  ;;  %v449_v23 = vmul.f32 1.442695, %v444_v21 }
 0x42e   :  { %v455_v13 = vsel %vm87_vm0, %v1231_v22, 0.0 }
 0x42f   :  { %900 = vpow2.f32 %v449_v23  ;;  %456 = vadd.xlane.f32.xlu1 %v455_v13 }
 0x432   :  { %v439_v25 = vpop.xlane.xlu2 %438 }
 0x433   :  { %v445_v28 = vsub.f32 %v427_v26, %v439_v25 }
 0x435   :  { %v901_v27 = vpop.eup %900  ;;  %v451_v31 = vmul.f32 1.442695, %v445_v28 }
 0x436   :  { %v458_v29 = vsel %vm87_vm0, %v901_v27, 0.0 }
 0x437   :  { %459 = vadd.xlane.f32.xlu2 %v458_v29  ;;  %551 = vmax.xlane.f32.xlu1 %v550_v30  ;;  %902 = vpow2.f32 %v451_v31 }
 0x43a   :  { %v442_v33 = vpop.xlane.xlu1 %441 }
 0x43b   :  { %v446_v34 = vsub.f32 %v429_v8, %v442_v33 }
 0x43d   :  { %v453_v36 = vmul.f32 1.442695, %v446_v34  ;;  %v903_v39 = vpop.eup %902 }
 0x43e   :  { %v461_v43 = vsel %vm87_vm0, %v903_v39, 0.0 }
 0x43f   :  { %554 = vmax.xlane.f32.xlu2 %v553_v35  ;;  %904 = vpow2.f32 %v453_v36 }
 0x441   :  { %v549_v61 = vpop.xlane.xlu0 %548 }
 0x442   :  { %v559_v37 = vsub.f32 %v538_v11, %v549_v61 }
 0x444   :  { %v563_v41 = vmul.f32 1.442695, %v559_v37 }
 0x445   :  { %v905_v38 = vpop.eup %904 }
 0x446   :  { %906 = vpow2.f32 %v563_v41  ;;  %v464_v46 = vsel %vm87_vm0, %v905_v38, 0.0 }
 0x447   :  { %462 = vadd.xlane.f32.xlu2 %v461_v43 }
 0x44c   :  { %v1241_v44 = vpop.eup %906 }
 0x44d   :  { %v571_v4 = vsel %vm87_vm0, %v1241_v44, 0.0 }
 0x44e   :  { %572 = vadd.xlane.f32.xlu0 %v571_v4 }
 0x44f   :  { %465 = vadd.xlane.f32.xlu2 %v464_v46  ;;  %v815_v46 = vld [vmem:[#allocation2 + $0x8] sm:$0xff] }
 0x450   :  { %477 = vrot.lane.b32.xlu1 %v1078_v45, %s993_s27 }
 0x458   :  { %595 = vrot.lane.b32.xlu1 %v1071_v40, %s994_s28 }
 0x459   :  { %v558_v47 = vpop.xlane.xlu0 %557 }
 0x45a   :  { %v562_v56 = vsub.f32 %v1225_v16, %v558_v47  ;;  %v712_v47 = vsel %vm87_vm0, %v815_v46, 0 }
 0x45b   :  { %720 = vmatpush.bf16.xpose.msra.mxu1 %v712_v47 }
 0x45c   :  { %v569_v20 = vmul.f32 1.442695, %v562_v56 }
 0x462   :  { %837 = vrot.lane.b32.xlu0 %v836_v57, %s995_s29 }
 0x46c   :  { %v480_v48 = vpop.permute.xlu0 %479 }
 0x46d   :  { %495 = vmatpush.bf16.msrb.mxu3 %v480_v48  ;;  %v814_v48 = vld [vmem:[#allocation2] sm:$0xff] }
 0x4a2   :  { %v457_v49 = vpop.xlane.xlu1 %456 }
 0x4aa   :  { %v552_v58 = vpop.xlane.xlu1 %551  ;;  %v460_v59 = vpop.xlane.xlu2 %459 }
 0x4ab   :  { %v560_v60 = vsub.f32 %v540_v24, %v552_v58 }
 0x4ad   :  { %v565_v62 = vmul.f32 1.442695, %v560_v60 }
 0x4af   :  { %908 = vpow2.f32 %v565_v62 }
 0x4b0   :  { %910 = vrcp.f32 %v460_v59 }
 0x4b2   :  { %v555_v63 = vpop.xlane.xlu2 %554 }
 0x4b3   :  { %v561_v0 = vsub.f32 %v543_v32, %v555_v63 }
 0x4b5   :  { %v909_v2 = vpop.eup %908  ;;  %v567_v26 = vmul.f32 1.442695, %v561_v0 }
 0x4b6   :  { %v574_v40 = vsel %vm87_vm0, %v909_v2, 0.0  ;;  %v911_v55 = vpop.eup %910 }
 0x4b7   :  { %912 = vpow2.f32 %v567_v26  ;;  %575 = vadd.xlane.f32.xlu2 %v574_v40  ;;  %v472_v8 = vmul.f32 %v911_v55, %v901_v27 }
 0x4b8   :  { %914 = vrcp.f32 %v457_v49  ;;  %v709_v49 = vsel %vm87_vm0, %v814_v48, 0 }
 0x4b9   :  { %721 = vmatpush.bf16.xpose.msra.mxu1 %v709_v49 }
 0x4ba   :  { %v463_v54 = vpop.xlane.xlu2 %462 }
 0x4bd   :  { %v913_v57 = vpop.eup %912 }
 0x4be   :  { %v577_v3 = vsel %vm87_vm0, %v913_v57, 0.0  ;;  %v915_v7 = vpop.eup %914 }
 0x4bf   :  { %578 = vadd.xlane.f32.xlu1 %v577_v3  ;;  %v471_v9 = vmul.f32 %v915_v7, %v1231_v22 }
 0x4c1   :  { %v475_v12 = vpack.c.bf16 %v472_v8, %v471_v9  ;;  %v573_v23 = vpop.xlane.xlu0 %572 }
 0x4c2   :  { %v478_v10 = vpop.permute.xlu1 %477  ;;  %v466_v11 = vpop.xlane.xlu2 %465 }
 0x4c3   :  { %496 = vmatpush.bf16.msrb.mxu3 %v478_v10  ;;  %916 = vrcp.f32 %v466_v11 }
 0x4c4   :  { %918 = vrcp.f32 %v463_v54 }
 0x4c5   :  { %920 = vpow2.f32 %v569_v20 }
 0x4c6   :  { %792 = vmatmul.msk.bf16.vlgmr.msrb.gmra.mxu3 %vm87_vm0, %v475_v12  ;;  %922 = vrcp.f32 %v573_v23 }
 0x4c9   :  { %v917_v15 = vpop.eup %916 }
 0x4ca   :  { %v596_v14 = vpop.permute.xlu1 %595  ;;  %v919_v42 = vpop.eup %918  ;;  %v474_v17 = vmul.f32 %v917_v15, %v905_v38 }
 0x4cb   :  { %611 = vmatpush.bf16.msrb.mxu0 %v596_v14  ;;  %816 = vmatpush.bf16.msra.mxu3 %v596_v14  ;;  %v473_v18 = vmul.f32 %v919_v42, %v903_v39  ;;  %v921_v21 = vpop.eup %920 }
 0x4cc   :  { %v580_v22 = vsel %vm87_vm0, %v921_v21, 0.0  ;;  %v923_v24 = vpop.eup %922 }
 0x4cd   :  { %v476_v19 = vpack.c.bf16 %v474_v17, %v473_v18 }
 0x4cf   :  { %593 = vrot.lane.b32.xlu2 %v1078_v45, %s994_s28  ;;  %v587_v45 = vmul.f32 %v923_v24, %v1241_v44 }
 0x4d4   :  { %v838_v62 = vpop.permute.xlu0 %837 }
 0x4d5   :  { %v840_v0 = vunpack.i.h.bf16 %v838_v62 }
 0x4d6   :  { %793 = vmatmul.msk.bf16.gmra.mxu3 %vm87_vm0, %v476_v19 }
 0x4d7   :  { %v673_v5 = vsel %vm167_vm1, %v1196_v51, %v840_v0 }
 0x4f8   :  { %581 = vadd.xlane.f32.xlu2 %v580_v22 }
 0x52a   :  { %v576_v13 = vpop.xlane.xlu2 %575 }
 0x52b   :  { %924 = vrcp.f32 %v576_v13 }
 0x531   :  { %v925_v25 = vpop.eup %924 }
 0x532   :  { %v588_v27 = vmul.f32 %v925_v25, %v909_v2  ;;  %v594_v28 = vpop.permute.xlu2 %593  ;;  %v579_v35 = vpop.xlane.xlu1 %578  ;;  %v839_v2 = vunpack.i.l.bf16 %v838_v62 }
 0x533   :  { %612 = vmatpush.bf16.msrb.mxu0 %v594_v28  ;;  %817 = vmatpush.bf16.msra.mxu3 %v594_v28  ;;  %926 = vrcp.f32 %v579_v35 }
 0x534   :  { %v591_v29 = vpack.c.bf16 %v588_v27, %v587_v45 }
 0x536   :  { %796 = vmatmul.msk.bf16.vlgmr.msrb.gmra.mxu0 %vm87_vm0, %v591_v29 }
 0x539   :  { %v927_v61 = vpop.eup %926 }
 0x53a   :  { %v589_v39 = vmul.f32 %v927_v61, %v913_v57 }
 0x549   :  { %v498_v16 = vpop.f32.mrf.mxu3 }
 0x551   :  { %v500_v30 = vpop.f32.mrf.mxu3 }
 0x552   :  { %v841_v31 = vpack.i.bf16 %v500_v30, %v498_v16 }
 0x554   :  { %842 = vrot.lane.b32.xlu1 %v841_v31, %s996_s30 }
 0x559   :  { %v503_v32 = vpop.f32.mrf.mxu3 }
 0x561   :  { %v505_v33 = vpop.f32.mrf.mxu3 }
 0x562   :  { %v856_v34 = vpack.i.bf16 %v505_v33, %v503_v32 }
 0x564   :  { %857 = vrot.lane.b32.xlu2 %v856_v34, %s996_s30 }
 0x56b   :  { %v582_v36 = vpop.xlane.xlu2 %581 }
 0x56c   :  { %928 = vrcp.f32 %v582_v36 }
 0x572   :  { %v929_v37 = vpop.eup %928 }
 0x573   :  { %v590_v41 = vmul.f32 %v929_v37, %v921_v21 }
 0x575   :  { %v592_v43 = vpack.c.bf16 %v590_v41, %v589_v39 }
 0x577   :  { %797 = vmatmul.msk.bf16.vlgmr.msra.gmra.mxu3 %vm87_vm0, %v592_v43 }
 0x5b3   :  { %v614_v38 = vpop.f32.mrf.mxu0 }
 0x5bb   :  { %v616_v44 = vpop.f32.mrf.mxu0 }
 0x5bc   :  { %v846_v4 = vpack.i.bf16 %v616_v44, %v614_v38 }
 0x5be   :  { %847 = vrot.lane.b32.xlu0 %v846_v4, %s997_s5  ;;  %v858_v51 = vpop.permute.xlu2 %857 }
 0x5bf   :  { %v860_v15 = vunpack.i.h.bf16 %v858_v51  ;;  %v859_v42 = vunpack.i.l.bf16 %v858_v51 }
 0x5c6   :  { %852 = vrot.lane.b32.xlu0 %v851_v6, %s995_s29  ;;  %v843_v63 = vpop.permute.xlu1 %842  ;;  %v672_v6 = vsel %vm167_vm1, %v1194_v50, %v839_v2 }
 0x5c7   :  { %v845_v26 = vunpack.i.h.bf16 %v843_v63  ;;  %v844_v40 = vunpack.i.l.bf16 %v843_v63 }
 0x5c9   :  { %v678_v57 = vsel %vm676_vm2, %v673_v5, %v845_v26  ;;  %v677_v3 = vsel %vm676_vm2, %v672_v6, %v844_v40 }
 0x5fa   :  { %v619_v58 = vpop.f32.mrf.mxu3 }
 0x602   :  { %v621_v59 = vpop.f32.mrf.mxu3 }
 0x603   :  { %v861_v60 = vpack.i.bf16 %v621_v59, %v619_v58 }
 0x605   :  { %862 = vrot.lane.b32.xlu0 %v861_v60, %s997_s5 }
 0x630   :  { %v848_v1 = vpop.permute.xlu0 %847 }
 0x631   :  { %v850_v54 = vunpack.i.h.bf16 %v848_v1  ;;  %v849_v55 = vunpack.i.l.bf16 %v848_v1 }
 0x633   :  { %v683_v7 = vsel %vm681_vm3, %v678_v57, %v850_v54  ;;  %v682_v8 = vsel %vm681_vm3, %v677_v3, %v849_v55 }
 0x634   :  { %v686_v9 = vpack.c.bf16 %v683_v7, %v682_v8 }
 0x636   :  { %806 = vmatmul.msk.bf16.vlgmr.msra.gmra.mxu1 %vm87_vm0, %v686_v9 }
 0x638   :  { %v853_v10 = vpop.permute.xlu0 %852 }
 0x639   :  { %v855_v11 = vunpack.i.h.bf16 %v853_v10  ;;  %v854_v12 = vunpack.i.l.bf16 %v853_v10 }
 0x63b   :  { %v675_v50 = vsel %vm167_vm1, %v1200_v53, %v855_v11  ;;  %v674_v14 = vsel %vm167_vm1, %v1198_v52, %v854_v12 }
 0x63c   :  { %v679_v56 = vsel %vm676_vm2, %v674_v14, %v859_v42  ;;  %v680_v20 = vsel %vm676_vm2, %v675_v50, %v860_v15 }
 0x677   :  { %v863_v17 = vpop.permute.xlu0 %862 }
 0x678   :  { %v865_v18 = vunpack.i.h.bf16 %v863_v17  ;;  %v864_v19 = vunpack.i.l.bf16 %v863_v17 }
 0x67a   :  { %v684_v21 = vsel %vm681_vm3, %v679_v56, %v864_v19  ;;  %v685_v22 = vsel %vm681_vm3, %v680_v20, %v865_v18 }
 0x67b   :  { %v687_v23 = vpack.c.bf16 %v685_v22, %v684_v21 }
 0x67d   :  { %807 = vmatmul.msk.bf16.gmra.mxu1 %vm87_vm0, %v687_v23 }
 0x6b3   :  { %v723_v53 = vpop.f32.mrf.mxu1 }
 0x6b4   :  { %733 = vst.msk [vmem:[#allocation5] sm:$0xff] %vm87_vm0, %v723_v53 }
 0x6bb   :  { %v725_v52 = vpop.f32.mrf.mxu1 }
 0x6bc   :  { %734 = vst.msk [vmem:[#allocation5 + $0x8] sm:$0xff] %vm87_vm0, %v725_v52 }
 0x6fa   :  { %v728_v13 = vpop.f32.mrf.mxu1 }
 0x6fb   :  { %735 = vst.msk [vmem:[#allocation5 + $0x10] sm:$0xff] %vm87_vm0, %v728_v13 }
 0x702   :  { %v730_v24 = vpop.f32.mrf.mxu1 }
 0x703   :  { %736 = vst.msk [vmem:[#allocation5 + $0x18] sm:$0xff] %vm87_vm0, %v730_v24 }
 0x704   :  { %749 = dma.vmem_to_hbm [thread:$0]  %s742_s7, 512, %s744_s10, [#allocation4], %s999_s11, %s999_s11, %s995_s29  }
 0x705   :  { %980 = dma.done.wait [#allocation4], 512  }
 0x706   :  { %981 = vsyncadd [#allocation4], 4294966784 }
 0x707   :  { %754 = vsyncpa [#allocation3], 1 }
 0x708   :  { %755 = vsyncpa [#allocation4], 1 }

</bundles_post_ra>
